<compile_context>
chip_gen: v7x
topology: tpu7x:2x2x1
jax: 0.10.0
libtpu: 0.0.40
codegen_flags: <defaults>
</compile_context>

<pallas_src>
import math

import numpy as np

import jax
import jax.numpy as jnp
from jax.experimental import pallas as pl
from jax.experimental.pallas import tpu as pltpu


# ----------------------------------------------------------------------------
# Fused kernel: 1x1 conv (matmul, BN scale folded) + shift + ReLU + avg-pool GEMM
# ----------------------------------------------------------------------------
def _adapter_kernel(x_ref, w_ref, shift_ref, pool_ref, out_ref):
    # x_ref:     [1, C_in, HW]      f32  (one image, channel-major, native NCHW order)
    # w_ref:     [C_out, C_in]      f32  (1x1 conv weight with BN scale folded in)
    # shift_ref: [C_out, 1]         f32  (folded BN shift, broadcast over HW lanes)
    # pool_ref:  [HW, HW_out]       bf16 (average pooling expressed as a matmul)
    # out_ref:   [1, C_out, HW_out] f32
    x = x_ref[0]                                                       # [C_in, HW]
    # 1x1 conv: tiny K (=C_in) contraction, f32 accumulate.
    y = jnp.dot(w_ref[...], x, preferred_element_type=jnp.float32)    # [C_out, HW]
    # Folded BatchNorm shift + ReLU on the VPU.
    z = jnp.maximum(y + shift_ref[...], 0.0)
    # Average pool as a bf16 MXU matmul (pool matrix already holds 1/(k*k)).
    out_ref[0] = jnp.dot(z.astype(jnp.bfloat16), pool_ref[...],
                         preferred_element_type=jnp.float32)           # [C_out, HW_out]


# ----------------------------------------------------------------------------
# Glue helpers
# ----------------------------------------------------------------------------
def _make_pool_matrix_T(H, W, k, s):
    """Static avg-pool matrix, pre-transposed: out[:, q] = sum_p in[:, p]*m[p, q]."""
    H_out = (H - k) // s + 1
    W_out = (W - k) // s + 1
    m = np.zeros((H * W, H_out * W_out), np.float32)
    inv = 1.0 / float(k * k)
    for oh in range(H_out):
        for ow in range(W_out):
            col = oh * W_out + ow
            for dh in range(k):
                for dw in range(k):
                    m[(oh * s + dh) * W + (ow * s + dw), col] = inv
    # bf16 is exact for k a power of two; otherwise ~0.4% relative, fine for the
    # FLOP-dominant pooling GEMM (v5e/v6e/v7x emulate f32 matmul with bf16 passes).
    return jnp.asarray(m, dtype=jnp.bfloat16), H_out, W_out


def vision_adapter_forward(x, conv_w, gamma, beta, running_mean, running_var,
                           *, pool_kernel, pool_stride, eps=1e-5):
    """Fused VisionAdapter.forward.

    x:      [B, C_in, H, W]  (NCHW, like the PyTorch module)
    conv_w: [C_out, C_in]    (1x1 Conv2d weight, squeezed)
    returns [B, C_out, H_out, W_out] f32
    """
    B, C_in, H, W = x.shape
    C_out = conv_w.shape[0]
    HW = H * W

    # Fold eval-mode BatchNorm: scale goes into the conv weight, shift stays.
    scale = gamma / jnp.sqrt(running_var + eps)                    # [C_out]
    shift = (beta - running_mean * scale).reshape(C_out, 1)        # [C_out, 1]
    w_scaled = conv_w.reshape(C_out, C_in) * scale[:, None]        # [C_out, C_in] f32

    pool_t, H_out, W_out = _make_pool_matrix_T(H, W, pool_kernel, pool_stride)
    HW_out = H_out * W_out

    # Free reshape only — no transpose, no channel padding, no dtype cast of x.
    x_flat = x.reshape(B, C_in, HW)

    out = pl.pallas_call(
        _adapter_kernel,
        grid=(B,),
        in_specs=[
            pl.BlockSpec((1, C_in, HW), lambda b: (b, 0, 0)),      # per-image pixels
            pl.BlockSpec((C_out, C_in), lambda b: (0, 0)),         # conv weight (VMEM-resident)
            pl.BlockSpec((C_out, 1), lambda b: (0, 0)),            # BN shift
            pl.BlockSpec((HW, HW_out), lambda b: (0, 0)),          # pooling matrix
        ],
        out_specs=pl.BlockSpec((1, C_out, HW_out), lambda b: (b, 0, 0)),
        out_shape=jax.ShapeDtypeStruct((B, C_out, HW_out), jnp.float32),
        compiler_params=pltpu.CompilerParams(
            dimension_semantics=("parallel",)),   # batch axis -> both TCs on v7x
    )(x_flat, w_scaled, shift, pool_t)

    # Already channel-major: just un-flatten the spatial dim.
    return out.reshape(B, C_out, H_out, W_out)


# ----------------------------------------------------------------------------
# Pure-JAX f32 reference (for a relaxed-tolerance correctness check)
# ----------------------------------------------------------------------------
def _reference_forward(x, conv_w, gamma, beta, mean, var,
                       *, pool_kernel, pool_stride, eps=1e-5):
    y = jnp.einsum("bchw,oc->bohw", x, conv_w)
    scale = gamma / jnp.sqrt(var + eps)
    shift = beta - mean * scale
    y = jnp.maximum(y * scale[None, :, None, None] + shift[None, :, None, None], 0.0)
    y = jax.lax.reduce_window(
        y, 0.0, jax.lax.add,
        (1, 1, pool_kernel, pool_kernel),
        (1, 1, pool_stride, pool_stride),
        "VALID")
    return y / float(pool_kernel * pool_kernel)


# ----------------------------------------------------------------------------
if __name__ == "__main__":
    key = jax.random.PRNGKey(0)
    k_x, k_w, k_g, k_b, k_m, k_v = jax.random.split(key, 6)

    # Small shapes consistent with the module: NCHW input, 1x1 conv 4 -> 32,
    # 2x2 average pooling with stride 2.
    B, C_in, H, W = 2, 4, 16, 16
    C_out = 32
    pool_kernel, pool_stride = 2, 2

    x = jax.random.normal(k_x, (B, C_in, H, W), jnp.float32)
    bound = 1.0 / math.sqrt(C_in)
    conv_w = jax.random.uniform(k_w, (C_out, C_in), jnp.float32, -bound, bound)
    gamma = jax.random.uniform(k_g, (C_out,), jnp.float32, 0.5, 1.5)
    beta = jax.random.uniform(k_b, (C_out,), jnp.float32, -0.1, 0.1)
    running_mean = 0.1 * jax.random.normal(k_m, (C_out,), jnp.float32)
    running_var = jax.random.uniform(k_v, (C_out,), jnp.float32, 0.5, 1.5)

    out = vision_adapter_forward(
        x, conv_w, gamma, beta, running_mean, running_var,
        pool_kernel=pool_kernel, pool_stride=pool_stride)
    out = jax.block_until_ready(out)

    H_out = (H - pool_kernel) // pool_stride + 1
    W_out = (W - pool_kernel) // pool_stride + 1
    assert out.shape == (B, C_out, H_out, W_out)
    assert out.dtype == jnp.float32

    ref = _reference_forward(
        x, conv_w, gamma, beta, running_mean, running_var,
        pool_kernel=pool_kernel, pool_stride=pool_stride)
    # Conv is f32; only the pooling GEMM runs in bf16 -> modest tolerance.
    np.testing.assert_allclose(np.asarray(out), np.asarray(ref), rtol=2e-2, atol=2e-2)

    print("KERNEL_OK")
</pallas_src>

<mosaic_0001>
module attributes {stable_mosaic.version = 11 : i64} {
  func.func @_adapter_kernel(%arg0: i32, %arg1: memref<1x4x256xf32, #tpu.memory_space<vmem>>, %arg2: memref<32x4xf32, #tpu.memory_space<vmem>>, %arg3: memref<32x1xf32, #tpu.memory_space<vmem>>, %arg4: memref<256x64xbf16, #tpu.memory_space<vmem>>, %arg5: memref<1x32x64xf32, #tpu.memory_space<vmem>>) attributes {dimension_semantics = [#tpu.dimension_semantics<parallel>], iteration_bounds = array<i64: 2>, scalar_prefetch = 0 : i64, scratch_operands = 0 : i64, tpu.core_type = #tpu.core_type<tc>, window_params = [{transform_indices = @transform_0, window_bounds = array<i64: 1, 4, 256>}, {pipeline_mode = #tpu.pipeline_mode<synchronous>, transform_indices = @transform_1, window_bounds = array<i64: 32, 4>}, {pipeline_mode = #tpu.pipeline_mode<synchronous>, transform_indices = @transform_2, window_bounds = array<i64: 32, 1>}, {pipeline_mode = #tpu.pipeline_mode<synchronous>, transform_indices = @transform_3, window_bounds = array<i64: 256, 64>}, {transform_indices = @transform_4, window_bounds = array<i64: 1, 32, 64>}]} {
    %c0 = arith.constant 0 : index
    %c0_0 = arith.constant 0 : index
    %c0_1 = arith.constant 0 : index
    %0 = vector.load %arg1[%c0, %c0_0, %c0_1] : memref<1x4x256xf32, #tpu.memory_space<vmem>>, vector<1x4x256xf32>
    %1 = vector.shape_cast %0 : vector<1x4x256xf32> to vector<4x256xf32>
    %c0_2 = arith.constant 0 : index
    %c0_3 = arith.constant 0 : index
    %2 = vector.load %arg2[%c0_2, %c0_3] : memref<32x4xf32, #tpu.memory_space<vmem>>, vector<32x4xf32>
    %cst = arith.constant dense<0.000000e+00> : vector<32x256xf32>
    %3 = tpu.matmul %2, %1, %cst {dimension_numbers = #tpu.dot_dimension_numbers<[1], [0], [0], [1], [0, 0, 1, 1], [], []>} : vector<32x4xf32>, vector<4x256xf32>, vector<32x256xf32> -> vector<32x256xf32>
    %c0_4 = arith.constant 0 : index
    %c0_5 = arith.constant 0 : index
    %4 = vector.load %arg3[%c0_4, %c0_5] : memref<32x1xf32, #tpu.memory_space<vmem>>, vector<32x1xf32>
    %5 = vector.broadcast %4 : vector<32x1xf32> to vector<32x256xf32>
    %6 = arith.addf %3, %5 : vector<32x256xf32>
    %cst_6 = arith.constant 0.000000e+00 : f32
    %7 = vector.broadcast %cst_6 : f32 to vector<32x256xf32>
    %8 = arith.maximumf %6, %7 : vector<32x256xf32>
    %9 = arith.truncf %8 : vector<32x256xf32> to vector<32x256xbf16>
    %c0_7 = arith.constant 0 : index
    %c0_8 = arith.constant 0 : index
    %10 = vector.load %arg4[%c0_7, %c0_8] : memref<256x64xbf16, #tpu.memory_space<vmem>>, vector<256x64xbf16>
    %cst_9 = arith.constant dense<0.000000e+00> : vector<32x64xf32>
    %11 = tpu.matmul %9, %10, %cst_9 {dimension_numbers = #tpu.dot_dimension_numbers<[1], [0], [0], [1], [0, 0, 1, 1], [], []>} : vector<32x256xbf16>, vector<256x64xbf16>, vector<32x64xf32> -> vector<32x64xf32>
    %c0_10 = arith.constant 0 : index
    %c0_11 = arith.constant 0 : index
    %c0_12 = arith.constant 0 : index
    %12 = vector.load %arg5[%c0_10, %c0_11, %c0_12] : memref<1x32x64xf32, #tpu.memory_space<vmem>>, vector<1x32x64xf32>
    %13 = vector.shape_cast %12 : vector<1x32x64xf32> to vector<32x64xf32>
    %14 = vector.shape_cast %11 : vector<32x64xf32> to vector<1x32x64xf32>
    tpu.vector_store %arg5[%c0_10, %c0_11, %c0_12], %14 {strides = array<i32>} : memref<1x32x64xf32, #tpu.memory_space<vmem>>, vector<1x32x64xf32>,
    return
  }
  func.func @transform_0(%arg0: i32) -> (i32, i32, i32) {
    %c0_i32 = arith.constant 0 : i32
    %c0_i32_0 = arith.constant 0 : i32
    %c0_i32_1 = arith.constant 0 : i32
    return %arg0, %c0_i32, %c0_i32_0 : i32, i32, i32
  }
  func.func @transform_1(%arg0: i32) -> (i32, i32) {
    %c0_i32 = arith.constant 0 : i32
    %c0_i32_0 = arith.constant 0 : i32
    %c0_i32_1 = arith.constant 0 : i32
    return %c0_i32, %c0_i32_0 : i32, i32
  }
  func.func @transform_2(%arg0: i32) -> (i32, i32) {
    %c0_i32 = arith.constant 0 : i32
    %c0_i32_0 = arith.constant 0 : i32
    %c0_i32_1 = arith.constant 0 : i32
    return %c0_i32, %c0_i32_0 : i32, i32
  }
  func.func @transform_3(%arg0: i32) -> (i32, i32) {
    %c0_i32 = arith.constant 0 : i32
    %c0_i32_0 = arith.constant 0 : i32
    %c0_i32_1 = arith.constant 0 : i32
    return %c0_i32, %c0_i32_0 : i32, i32
  }
  func.func @transform_4(%arg0: i32) -> (i32, i32, i32) {
    %c0_i32 = arith.constant 0 : i32
    %c0_i32_0 = arith.constant 0 : i32
    %c0_i32_1 = arith.constant 0 : i32
    return %arg0, %c0_i32, %c0_i32_0 : i32, i32, i32
  }
}

</mosaic_0001>

<bundles_post_ra>
// kernel: tpu_custom_call.1
= control target key start
LH: loop header
LB: loop body
LE: loop exit
PB: predicated region body
PF: predicated region fallthrough
CT: control target
= control target key end

     0   :  { %9 = vsyncpa [#allocation3], 0  ;;  %s1024_s0 = inlined_call_operand.vmem [shape: f32[2,4,256], index: 0, kind: input, shape index: {}]   ;;  %s1025_s1 = inlined_call_operand.vmem [shape: f32[32,4], index: 1, kind: input, shape index: {}]   ;;  %s1026_s2 = inlined_call_operand.vmem [shape: f32[32,1], index: 2, kind: input, shape index: {}]   ;;  %s1027_s3 = inlined_call_operand.vmem [shape: bf16[256,64], index: 3, kind: input, shape index: {}]   ;;  %s1028_s4 = inlined_call_operand.hbm [shape: f32[2,32,64], index: 4, kind: output, shape index: {}]  }
   0x1   :  { %11 = vsyncpa [#allocation3 + $0x1], 0  ;;  %s841_s15 = smov 0   ;;  %s843_s16 = smov 0  }
   0x2   :  { %s845_s17 = smov 0   ;;  %s847_s18 = smov 0  }
   0x3 LB: > { %s862_s19 = sadd.s32 4294967295, %s809_s18   ;;  %s605_s20 = sadd.s32 4294967294, %s809_s18   ;;  %s809_s18 = sphi %s847_s18, %s1034_s18   ;;  %s805_s17 = sphi %s845_s17, %s1033_s17   ;;  %s801_s16 = sphi %s843_s16, %s1032_s16   ;;  %s797_s15 = sphi %s841_s15, %s1031_s15  }
   0x4   : > { %s866_s21 = sadd.s32 1, %s809_s18   ;;  %s113_s22 = sadd.s32 1, %s805_s17 }
   0x5   : > { %s110_s23 = ssub.s32 %s809_s18, %s866_s21  ;;  %p123_p0 = scmp.ne.s32.totalorder %s805_s17, %s801_s16 }
   0x6   : > { %p111_p1 = scmp.eq.s32.totalorder %s110_s23, 0  ;;  %p124_p2 = scmp.eq.s32.totalorder %s862_s19, 1 }
   0x7   : > { %p129_p3 = scmp.ne.s32.totalorder %s801_s16, %s797_s15  ;;  %p130_p4 = scmp.eq.s32.totalorder %s605_s20, 1 }
   0x8   : > { %s877_s24 = scalar_select %p111_p1, %s805_s17, %s113_s22  }
   0x9   : > { %p879_p5 = por %p124_p2, %p123_p0  ;;  %p883_p6 = por %p130_p4, %p129_p3 }
   0xa   : > { %p608_p7 = scmp.ge.s32.totalorder %s809_s18, 1  ;;  %p165_p8 = scmp.lt.s32.totalorder %s809_s18, 3 }
   0xc   : > { %p166_p9 = pnand %p608_p7, %p165_p8 }
   0xd   : > { %p191_p10 = scmp.lt.s32.totalorder (!%p166_p9), %s862_s19, 1  ;;  %v811_v0 = vmov (!%p166_p9), 0.0   ;;  %v202_v1 = vld [vmem:[%s1026_s2] sm:$0xff] (!%p166_p9)  ;;  %v812_v2 = vmov (!%p166_p9), 0   ;;  %v203_v3 = vld [vmem:[%s1026_s2 + $0x8] sm:$0xff] (!%p166_p9)  ;;  %v204_v4 = vld [vmem:[%s1026_s2 + $0x10] sm:$0xff] (!%p166_p9) }
   0xe   : > { %169 = sbr.rel (%p166_p9) target bundleno = 494 (0x1ee), region = 36  ;;  %310 = vmatprep.mubr.f32.mxu0 (!%p166_p9), %v811_v0  ;;  %728 = vset.pattern.permute.xlu0 (!%p166_p9), %v812_v2  ;;  %v205_v5 = vld [vmem:[%s1026_s2 + $0x18] sm:$0xff] (!%p166_p9)  ;;  %v731_v6 = vld [vmem:[%s1027_s3 + $0x40] sm:$0xff] (!%p166_p9)   ;;  %v733_v8 = vld [vmem:[%s1027_s3 + $0x48] sm:$0xff] (!%p166_p9)   ;;  %vm241_vm0 = vcmask (!%p166_p9), 1043456   ;;  %vm228_vm1 = vcmask (!%p166_p9), 31744  }
   0xf   : > { %729 = vset.pattern.permute.xlu1 (!%p166_p9), %v812_v2  ;;  %208 = vperm.xlu0 (!%p166_p9), %728, %v202_v1   ;;  %v732_v7 = vld [vmem:[%s1027_s3] sm:$0xff] (!%p166_p9)   ;;  %v734_v12 = vld [vmem:[%s1027_s3 + $0x8] sm:$0xff] (!%p166_p9)   ;;  %v735_v14 = vld [vmem:[%s1027_s3 + $0x50] sm:$0xff] (!%p166_p9)   ;;  %s188_s30 = sand.u32 (!%p166_p9), 1, %s801_s16   ;;  %vm524_vm2 = vcmask (!%p166_p9), 523264   ;;  %s640_s7 = sshll.u32 (!%p166_p9), %s862_s19, 9 }
  0x10   : > { %218 = vperm.xlu1 (!%p166_p9), %729, %v204_v4   ;;  %669 = vmatprep.subr.bf16.mxu1 (!%p166_p9), %v731_v6  ;;  %v198_v11 = vld [vmem:[%s1025_s1] sm:$0xff] (!%p166_p9)  ;;  %v199_v13 = vld [vmem:[%s1025_s1 + $0x8] sm:$0xff] (!%p166_p9)  ;;  %v736_v15 = vld [vmem:[%s1027_s3 + $0x10] sm:$0xff] (!%p166_p9)   ;;  %s609_s5 = sshll.u32 (!%p166_p9), %s188_s30, 5  ;;  %s979_s10 = scalar_lea.hbm (!%p166_p9), %s1028_s4, %s640_s7 }
  0x11   : > { %677 = vmatpush3.bf16.msra.mxu1 (!%p166_p9), %v732_v7  ;;  %v737_v16 = vld [vmem:[%s1027_s3 + $0x58] sm:$0xff] (!%p166_p9)   ;;  %v200_v17 = vld [vmem:[%s1025_s1 + $0x10] sm:$0xff] (!%p166_p9)  ;;  %v739_v19 = vld [vmem:[%s1027_s3 + $0x60] sm:$0xff] (!%p166_p9)  }
  0x12   : > { %670 = vmatprep.subr.bf16.mxu1 (!%p166_p9), %v733_v8  ;;  %v738_v18 = vld [vmem:[%s1027_s3 + $0x18] sm:$0xff] (!%p166_p9)   ;;  %v740_v21 = vld [vmem:[%s1027_s3 + $0x20] sm:$0xff] (!%p166_p9)   ;;  %v741_v22 = vld [vmem:[%s1027_s3 + $0x68] sm:$0xff] (!%p166_p9)  }
  0x13   : > { %213 = vperm.xlu0 (!%p166_p9), %728, %v203_v3   ;;  %v201_v20 = vld [vmem:[%s1025_s1 + $0x18] sm:$0xff] (!%p166_p9)  ;;  %v742_v23 = vld [vmem:[%s1027_s3 + $0x28] sm:$0xff] (!%p166_p9)   ;;  %v743_v24 = vld [vmem:[%s1027_s3 + $0x70] sm:$0xff] (!%p166_p9)  }
  0x14   : > { %223 = vperm.xlu1 (!%p166_p9), %729, %v205_v5   ;;  %v744_v25 = vld [vmem:[%s1027_s3 + $0x30] sm:$0xff] (!%p166_p9)   ;;  %v745_v26 = vld [vmem:[%s1027_s3 + $0x78] sm:$0xff] (!%p166_p9)  }
  0x15   : > { %s192_s29 = scalar_select %p191_p10, %s862_s19, 1  ;;  %678 = vmatpush3.bf16.msra.mxu1 %v734_v12  ;;  %v746_v27 = vld [vmem:[%s1027_s3 + $0x38] sm:$0xff]  }
  0x16   : > { %671 = vmatprep.subr.bf16.mxu1 %v735_v14  ;;  %s983_s19 = scalar_lea.sflag [#allocation3], %s188_s30 }
  0x17   : > { %s639_s12 = sshll.u32 %s192_s29, 3  ;;  %s190_s29 = scalar_lea.vmem [#allocation2], %s609_s5 }
  0x18   : > { %s195_s23 = scalar_lea.vmem %s1024_s0, %s639_s12  ;;  %s543_s6 = sshll.u32 %s190_s29, 4  ;;  %s974_s6 = int_to_ptr.vmem [resolvable:$true] %s543_s6 }
  0x19   : > { %v197_v9 = vld [vmem:[%s195_s23] sm:$0xff]  ;;  %679 = vmatpush3.bf16.msra.mxu1 %v736_v15  ;;  %s747_s11 = scalar_lea.vmem %s974_s6, 512  ;;  %s813_s12 = smov [#allocation2]  }
  0x1a   : > { %v227_v10 = vcombine.high %v197_v9, %v197_v9  ;;  %672 = vmatprep.subr.bf16.mxu1 %v737_v16  ;;  %p748_p11 = scmp.ne.s32.totalorder %s974_s6, %s747_s11  ;;  %s751_s13 = sshll.u32 %s813_s12, 4  ;;  %s752_s13 = int_to_ptr.vmem [resolvable:$false] %s751_s13 }
  0x1b   : > { %s753_s14 = scalar_lea.vmem %s752_s13, 1024  ;;  %p754_p0 = scmp.lt.s32.totalorder %s974_s6, %s752_s13 }
  0x1c   : > { %612 = vmatprep.subr.msk.mxu0 %vm241_vm0, %v227_v10  ;;  %p749_p12 = pnand %p748_p11, %p879_p5  ;;  %p755_p1 = scmp.lt.s32.totalorder %s753_s14, %s747_s11 }
  0x1d   : > { %613 = vmatpush1.msk.msra.mxu0 %vm241_vm0, %v197_v9  ;;  %680 = vmatpush3.bf16.msra.mxu1 %v738_v18 }
  0x1e   : > { %614 = vmatmul.mubr.msk.f32.vlgmr.msra.gmra.mrb[0].mxu0 %vm228_vm1, %v198_v11  ;;  %641 = vmatprep.subr.bf16.mxu0 %v731_v6  ;;  %p750_p13 = pneg %p749_p12  ;;  %p756_p2 = por %p755_p1, %p754_p0 }
  0x1f   : > { %316 = vmatprep.mubr.f32.mxu0 %v811_v0  ;;  %642 = vmatpush3.bf16.msra.mxu0 %v732_v7 }
  0x20   : > { %643 = vmatprep.subr.bf16.mxu0 %v733_v8  ;;  %673 = vmatprep.subr.bf16.mxu1 %v739_v19  ;;  %p757_p3 = pnand %p756_p2, %p750_p13 }
  0x21   : > { %681 = vmatpush3.bf16.msra.mxu1 %v740_v21 }
  0x22   : > { %615 = vmatmul.mubr.msk.f32.gmra.mrb[2].mxu0 %vm228_vm1, %v199_v13  ;;  %674 = vmatprep.subr.bf16.mxu1 %v741_v22 }
  0x23   : > { %322 = vmatprep.mubr.f32.mxu0 %v811_v0  ;;  %644 = vmatpush3.bf16.msra.mxu0 %v734_v12 }
  0x24   : > { %645 = vmatprep.subr.bf16.mxu0 %v735_v14 }
  0x25   : > { %682 = vmatpush3.bf16.msra.mxu1 %v742_v23 }
  0x26   : > { %616 = vmatmul.mubr.msk.f32.gmra.mrb[4].mxu0 %vm228_vm1, %v200_v17  ;;  %675 = vmatprep.subr.bf16.mxu1 %v743_v24 }
  0x27   : > { %328 = vmatprep.mubr.f32.mxu0 %v811_v0  ;;  %646 = vmatpush3.bf16.msra.mxu0 %v736_v15 }
  0x28   : > { %647 = vmatprep.subr.bf16.mxu0 %v737_v16 }
  0x29   : > { %683 = vmatpush3.bf16.msra.mxu1 %v744_v25 }
  0x2a   : > { %617 = vmatmul.mubr.msk.f32.gmra.mrb[6].mxu0 %vm228_vm1, %v201_v20  ;;  %676 = vmatprep.subr.bf16.mxu1 %v745_v26 }
  0x2b   : > { %648 = vmatpush3.bf16.msra.mxu0 %v738_v18 }
  0x2c   : > { %649 = vmatprep.subr.bf16.mxu0 %v739_v19 }
  0x2d   : > { %684 = vmatpush3.bf16.msra.mxu1 %v746_v27 }
  0x2f   : > { %650 = vmatpush3.bf16.msra.mxu0 %v740_v21 }
  0x30   : > { %651 = vmatprep.subr.bf16.mxu0 %v741_v22 }
  0x33   : > { %652 = vmatpush3.bf16.msra.mxu0 %v742_v23 }
  0x34   : > { %653 = vmatprep.subr.bf16.mxu0 %v743_v24 }
  0x37   : > { %654 = vmatpush3.bf16.msra.mxu0 %v744_v25 }
  0x38   : > { %655 = vmatprep.subr.bf16.mxu0 %v745_v26 }
  0x3b   : > { %656 = vmatpush3.bf16.msra.mxu0 %v746_v27 }
  0x8e   : > { %v209_v28 = vpop.permute.xlu0 %208 }
  0x8f   : > { %v219_v37 = vpop.permute.xlu1 %218 }
  0x92   : > { %v214_v31 = vpop.permute.xlu0 %213 }
  0x93   : > { %v224_v48 = vpop.permute.xlu1 %223 }
  0xf1   : > { %v312_v29 = vpop.f32.mrb[0].mxu0 }
  0xf2   : > { %v314_v30 = vpop.f32.mrb[1].mxu0  ;;  %v313_v32 = vadd.f32 %v312_v29, %v209_v28 }
  0xf3   : > { %v315_v33 = vadd.f32 %v314_v30, %v209_v28 }
  0xf4   : > { %v335_v39 = vmax.f32 %v313_v32, 0.0 }
  0xf5   : > { %v318_v34 = vpop.f32.mrb[2].mxu0  ;;  %v336_v41 = vmax.f32 %v315_v33, 0.0 }
  0xf6   : > { %v319_v35 = vadd.f32 %v318_v34, %v214_v31  ;;  %v320_v36 = vpop.f32.mrb[3].mxu0 }
  0xf7   : > { %v321_v38 = vadd.f32 %v320_v36, %v214_v31 }
  0xf8   : > { %v337_v40 = vmax.f32 %v319_v35, 0.0 }
  0xf9   : > { %v338_v42 = vmax.f32 %v321_v38, 0.0  ;;  %v324_v43 = vpop.f32.mrb[4].mxu0 }
  0xfa   : > { %v343_v44 = vpack.c.bf16 %v337_v40, %v335_v39  ;;  %v326_v45 = vpop.f32.mrb[5].mxu0  ;;  %v325_v47 = vadd.f32 %v324_v43, %v219_v37 }
  0xfb   : > { %v344_v46 = vpack.c.bf16 %v338_v42, %v336_v41  ;;  %v327_v49 = vadd.f32 %v326_v45, %v219_v37 }
  0xfc   : > { %v339_v54 = vmax.f32 %v325_v47, 0.0 }
  0xfd   : > { %v330_v50 = vpop.f32.mrb[6].mxu0  ;;  %507 = vmatprep.mubr.bf16.mxu0 %v344_v46  ;;  %v340_v56 = vmax.f32 %v327_v49, 0.0 }
  0xfe   : > { %v331_v51 = vadd.f32 %v330_v50, %v224_v48  ;;  %v332_v52 = vpop.f32.mrb[7].mxu0  ;;  %508 = vmatmul.mubr.bf16.vlgmr.msra.gmra.mrb[8].mxu0 %v343_v44 }
  0xff   : > { %v333_v53 = vadd.f32 %v332_v52, %v224_v48 }
 0x100   : > { %v341_v55 = vmax.f32 %v331_v51, 0.0 }
 0x101   : > { %v342_v57 = vmax.f32 %v333_v53, 0.0 }
 0x102   : > { %v345_v58 = vpack.c.bf16 %v341_v55, %v339_v54 }
 0x103   : > { %v346_v59 = vpack.c.bf16 %v342_v57, %v340_v56 }
 0x105   : > { %515 = vmatprep.mubr.bf16.mxu1 %v346_v59 }
 0x106   : > { %516 = vmatmul.mubr.bf16.vlgmr.msra.gmra.mrb[0].mxu1 %v345_v58 }
 0x1d1   : > { %v657_v60 = vpop.f32.mrb[8].mxu0 }
 0x1d2   : > { %v658_v61 = vpop.f32.mrb[9].mxu0 }
 0x1d3   : > { %v659_v62 = vadd.f32 %v658_v61, %v657_v60  ;;  %v660_v63 = vpop.f32.mrb[10].mxu0 }
 0x1d4   : > { %v661_v0 = vpop.f32.mrb[11].mxu0 }
 0x1d5   : > { %525 = vst.msk [vmem:[%s190_s29] sm:$0xff] %vm524_vm2, %v659_v62  ;;  %v662_v1 = vadd.f32 %v661_v0, %v660_v63 }
 0x1d7   : > { %526 = vst.msk [vmem:[%s190_s29 + $0x8] sm:$0xff] %vm524_vm2, %v662_v1 }
 0x1d9   : > { %v663_v2 = vpop.f32.mrb[0].mxu1 }
 0x1da   : > { %v664_v3 = vpop.f32.mrb[1].mxu1 }
 0x1db   : > { %v665_v4 = vadd.f32 %v664_v3, %v663_v2  ;;  %v666_v5 = vpop.f32.mrb[2].mxu1 }
 0x1dc   : > { %v667_v6 = vpop.f32.mrb[3].mxu1 }
 0x1dd   : > { %527 = vst.msk [vmem:[%s190_s29 + $0x10] sm:$0xff] %vm524_vm2, %v665_v4  ;;  %v668_v7 = vadd.f32 %v667_v6, %v666_v5 }
 0x1df   : > { %528 = vst.msk [vmem:[%s190_s29 + $0x18] sm:$0xff] %vm524_vm2, %v668_v7 }
 0x1e0   : > { %760 = shalt.err (!%p757_p3)
}
 0x1e1   : > { %s761_s20 = scalar_lea.hbm %s979_s10, 512  ;;  %s765_s27 = scalar_lea.hbm %s1028_s4, 1024 }
 0x1e2   : > { %p762_p4 = scmp.ne.s32.totalorder %s979_s10, %s761_s20  ;;  %p766_p9 = scmp.lt.u32.totalorder %s979_s10, %s1028_s4 }
 0x1e3   : > { %p767_p10 = scmp.lt.u32.totalorder %s765_s27, %s761_s20  ;;  %p769_p12 = scmp.lt.u32.totalorder %s761_s20, %s979_s10 }
 0x1e4   : > { %p763_p7 = pnand %p762_p4, %p879_p5 }
 0x1e5   : > { %p768_p11 = por %p767_p10, %p766_p9 }
 0x1e6   : > { %p764_p8 = pneg %p763_p7 }
 0x1e7   : > { %p770_p13 = por %p769_p12, %p768_p11 }
 0x1e9   : > { %p771_p0 = pnand %p770_p13, %p764_p8 }
 0x1eb   : > { %774 = shalt.err (!%p771_p0)
}
 0x1ec   : > { %s814_s5 = smov 128   ;;  %s815_s29 = smov 8  }
 0x1ed   : > { %685 = dma.vmem_to_hbm [thread:$0]  (%p879_p5), %s974_s6, 512, %s979_s10, %s983_s19, %s814_s5, %s814_s5, %s815_s29  }
 0x1ee PF: > { %p691_p1 = scmp.ge.s32.totalorder %s809_s18, 2  ;;  %s558_s7 = sand.u32 1, %s797_s15  }
 0x1ef   : > { %s559_s8 = scalar_lea.sflag [#allocation3], %s558_s7 }
 0x1f0   : > { %p688_p2 = pnand %p691_p1, %p883_p6 }
 0x1f2   : > { %792 = dma.done.wait (!%p688_p2), %s559_s8, 512  }
 0x1f3   : > { %794 = vsyncadd (!%p688_p2), %s559_s8, 4294966784  ;;  %p14_p3 = scmp.ge.s32.totalorder %s866_s21, 4   ;;  %s1031_s15 = smov %s801_s16 }
 0x1f4   : > { %s1032_s16 = smov %s805_s17  ;;  %s1033_s17 = smov %s877_s24 }
 0x1f5   : > { %s1034_s18 = smov %s866_s21  ;;  %16 = sbr.rel (!%p14_p3) target bundleno = 3 (0x3), region = 71 }
 0x1fc   :  { %564 = vsyncpa [#allocation3], 1 }
 0x1fd   :  { %566 = vsyncpa [#allocation3 + $0x1], 1 }

</bundles_post_ra>
